<compile_context>
chip_gen: v7x
topology: tpu7x:2x2x1
jax: 0.10.0
libtpu: 0.0.40
codegen_flags: <defaults>
</compile_context>

<pallas_src>
import functools
import math

import jax
import jax.numpy as jnp
from jax import lax
from jax.experimental import pallas as pl
from jax.experimental.pallas import tpu as pltpu

SELU_ALPHA = 1.6732632423543772
SELU_SCALE = 1.0507009873554805


def _selu(x):
    return SELU_SCALE * jnp.where(x > 0, x, SELU_ALPHA * (jnp.exp(x) - 1.0))


def dmon_kernel(inv2e_ref, x_ref, w_ref, skip_ref, bg_ref, wt_ref, bt_ref,
                dinv_row_ref, a_ref, dinv_col_ref, deg_ref,
                loss_ref,
                xw_ref, assign_ref, sta_ref, nl_ref, csize_ref,
                *, tn, n_nodes, n_clusters, cluster_size_reg):
    t = pl.program_id(0)                 # node-row tile index (single-axis grid)
    n_tiles = pl.num_programs(0)
    row0 = pl.multiple_of(t * tn, tn)

    @pl.when(t == 0)
    def _init():
        # X @ W computed once; resident for every row tile.
        xw_ref[...] = jnp.dot(x_ref[...], w_ref[...],
                              preferred_element_type=jnp.float32)
        sta_ref[...] = jnp.zeros_like(sta_ref)
        nl_ref[...] = jnp.zeros_like(nl_ref)
        csize_ref[...] = jnp.zeros_like(csize_ref)
        loss_ref[0] = 0.0

    # Raw 0/1 adjacency row tile (exact in bf16), cast once, reused twice.
    a_tile = a_ref[...].astype(jnp.float32)                       # (tn, N)

    # --- build assignments for this tile ------------------------------------
    # Normalised adjacency rebuilt in-kernel: dinv_i * A_ij * dinv_j (one VPU mul).
    an_tile = a_tile * dinv_col_ref[...] * dinv_row_ref[...]
    agg = jnp.dot(an_tile, xw_ref[...], preferred_element_type=jnp.float32)
    xw_rows = xw_ref[pl.ds(row0, tn), :]
    gcn = _selu(xw_rows * skip_ref[...] + agg + bg_ref[...])
    logits = jnp.dot(gcn, wt_ref[...],
                     preferred_element_type=jnp.float32) + bt_ref[...]
    m = jnp.max(logits, axis=1, keepdims=True)
    e = jnp.exp(logits - m)
    denom = jnp.sum(e, axis=1, keepdims=True)
    s_rows = e * pl.reciprocal(denom, approx=True)                # (tn, K)
    # Assignments kept only in VMEM scratch (never an (N, K) HBM write).
    assign_ref[pl.ds(row0, tn), :] = s_rows

    # --- accumulate loss reductions in the SAME pass over A -----------------
    # STA += S_tile^T @ A_tile  -> (K, N), lane-dense; gives tr(S^T A S) at the end.
    sta_ref[...] += lax.dot_general(
        s_rows, a_tile, (((0,), (0,)), ((), ())),
        preferred_element_type=jnp.float32)
    nl_ref[...] += jnp.sum(deg_ref[...] * s_rows, axis=0, keepdims=True)
    csize_ref[...] += jnp.sum(s_rows, axis=0, keepdims=True)

    @pl.when(t == n_tiles - 1)
    def _finalize():
        k = n_clusters
        # tr(S^T A S) = trace of (S^T A) @ S — one tiny (K,N)x(N,K) matmul.
        pooled = jnp.dot(sta_ref[...], assign_ref[...],
                         preferred_element_type=jnp.float32)       # (K, K)
        rr = lax.broadcasted_iota(jnp.int32, (k, k), 0)
        cc = lax.broadcasted_iota(jnp.int32, (k, k), 1)
        trace_gp = jnp.sum(jnp.where(rr == cc, pooled, jnp.zeros_like(pooled)))

        inv2e = inv2e_ref[0]               # 1/(2*n_edges); 0 if the graph is empty
        nl = nl_ref[...]
        trace_norm = jnp.sum(nl * nl) * inv2e
        spectral_loss = -(trace_gp - trace_norm) * inv2e
        cs = csize_ref[...]
        cluster_loss = (jnp.sqrt(jnp.sum(cs * cs)) / n_nodes
                        * math.sqrt(float(k)) - 1.0) * cluster_size_reg
        loss_ref[0] = spectral_loss + cluster_loss


def _round_up(x, m):
    return (x + m - 1) // m * m


def _vmem_estimate(n, f, h, k, tn):
    """Rough padded resident footprint + double-buffered tiles + headroom."""
    def pad32(r, c):
        return _round_up(r, 8) * _round_up(c, 128) * 4
    def pad16(r, c):
        return _round_up(r, 16) * _round_up(c, 128) * 2
    resident = (pad32(n, f) + pad32(f, h) + 2 * pad32(1, h) + pad32(h, k)
                + pad32(1, k) + pad32(1, n))
    scratch = pad32(n, h) + pad32(n, k) + pad32(k, n) + 2 * pad32(1, k)
    streamed = 2 * (pad16(tn, n) + 2 * pad32(tn, 1))
    return 2 * resident + 2 * streamed + scratch + (4 << 20)


def dmon_forward(A, dinv, X, W, skip_w, bg, Wt, bt, *,
                 n_clusters, cluster_size_reg, tile_rows=None):
    """Fused DMoN forward (extra_loss=False branch). Returns (1,) f32 loss.

    A    : (N, N) raw 0/1 adjacency (cast to bf16 for HBM streaming).
    dinv : (N,)   D^{-1/2}; graph_normalised is rebuilt in-kernel as
           dinv[:, None] * A * dinv[None, :].
    """
    # TODO(synk): assumes graph_normalised == diag(dinv) @ A @ diag(dinv); if the
    # pipeline normalises differently (e.g. adds self-loops) pass matching inputs.
    N, F = X.shape
    H = W.shape[1]
    K = Wt.shape[1]

    # --- per-graph constants, computed once outside the kernel ----------------
    a_f32 = A.astype(jnp.float32)
    deg = jnp.sum(a_f32, axis=0).reshape(N, 1)                 # column degrees
    n_edges = jnp.sum((a_f32 != 0.0).astype(jnp.float32))      # == sparse _nnz()
    inv_2e = jnp.where(n_edges > 0.0, 0.5 / n_edges, 0.0).reshape(1)
    a_bf16 = A.astype(jnp.bfloat16)                            # 0/1 exact in bf16
    dinv_row = dinv.reshape(1, N).astype(jnp.float32)
    dinv_col = dinv.reshape(N, 1).astype(jnp.float32)

    # --- node-row tile size ----------------------------------------------------
    if tile_rows is None:
        tile_rows = next((c for c in (512, 256, 128, 64, 32, 16)
                          if c <= N and N % c == 0), N)
    tn = int(tile_rows)
    if not (N % tn == 0 and (tn % 16 == 0 or tn == N)):
        raise ValueError(f"tile_rows={tn} must divide N={N} and be a multiple of 16")
    n_tiles = N // tn

    const = lambda t: (0, 0)
    rowtile = lambda t: (t, 0)
    smem = pl.BlockSpec(memory_space=pltpu.MemorySpace.SMEM)

    grid_spec = pltpu.PrefetchScalarGridSpec(
        num_scalar_prefetch=0,
        grid=(n_tiles,),
        in_specs=[
            smem,                                   # inv_2e (1,) scalar
            pl.BlockSpec((N, F), const),            # X            (resident)
            pl.BlockSpec((F, H), const),            # GCN weight
            pl.BlockSpec((1, H), const),            # skip weight
            pl.BlockSpec((1, H), const),            # GCN bias
            pl.BlockSpec((H, K), const),            # transform weight
            pl.BlockSpec((1, K), const),            # transform bias
            pl.BlockSpec((1, N), const),            # dinv row broadcast
            pl.BlockSpec((tn, N), rowtile),         # A row tile (bf16, streamed)
            pl.BlockSpec((tn, 1), rowtile),         # dinv for tile rows
            pl.BlockSpec((tn, 1), rowtile),         # degrees for tile rows
        ],
        out_specs=smem,                             # scalar loss
        scratch_shapes=[
            pltpu.VMEM((N, H), jnp.float32),        # X @ W
            pltpu.VMEM((N, K), jnp.float32),        # assignments S
            pltpu.VMEM((K, N), jnp.float32),        # S^T A accumulator
            pltpu.VMEM((1, K), jnp.float32),        # S^T d accumulator
            pltpu.VMEM((1, K), jnp.float32),        # cluster-size accumulator
        ],
    )

    kernel = functools.partial(
        dmon_kernel, tn=tn, n_nodes=float(N), n_clusters=int(n_clusters),
        cluster_size_reg=float(cluster_size_reg))

    # Cap at 64 MiB so the request is valid on v7x as well as v5e/v6e.
    vmem_limit = int(min(max(_vmem_estimate(N, F, H, K, tn), 16 << 20), 64 << 20))

    # TODO(synk): on v7x the tile axis could emit per-tile partial accumulators
    # (reduced in the wrapper) to use both TensorCores; kept "arbitrary" here
    # because the accumulators carry across tiles.
    return pl.pallas_call(
        kernel,
        out_shape=jax.ShapeDtypeStruct((1,), jnp.float32),
        grid_spec=grid_spec,
        compiler_params=pltpu.CompilerParams(
            dimension_semantics=("arbitrary",),
            vmem_limit_bytes=vmem_limit),
    )(inv_2e, X, W, skip_w, bg, Wt, bt, dinv_row, a_bf16, dinv_col, deg)


def dmon_reference(A, dinv, X, W, skip_w, bg, Wt, bt, *,
                   n_clusters, cluster_size_reg):
    """Pure-JAX reference with identical semantics (for a sanity check)."""
    A = A.astype(jnp.float32)
    An = A * dinv[:, None] * dinv[None, :]
    xw = X @ W
    gcn = _selu(xw * skip_w + An @ xw + bg)
    logits = gcn @ Wt + bt
    assign = jax.nn.softmax(logits, axis=1)
    n_edges = jnp.sum((A != 0.0).astype(jnp.float32))
    deg = jnp.sum(A, axis=0)[:, None]
    ga = A @ assign
    trace_gp = jnp.sum(ga * assign)
    nl = assign.T @ deg
    trace_norm = jnp.sum(nl * nl) / 2.0 / n_edges
    spectral = -(trace_gp - trace_norm) / 2.0 / n_edges
    cs = jnp.sum(assign, axis=0)
    cluster = (jnp.sqrt(jnp.sum(cs * cs)) / A.shape[0]
               * math.sqrt(float(n_clusters)) - 1.0) * cluster_size_reg
    return spectral + cluster


if __name__ == "__main__":
    # args: n_nodes=64, n_features=32, architecture=32, n_clusters=8,
    #       cluster_size_regularization=1.0, dropout_rate=0.0 (eval)
    N, F, H, K = 64, 32, 32, 8
    cluster_size_reg = 1.0

    key = jax.random.PRNGKey(0)
    k_adj, k_feat, k_w, k_wt = jax.random.split(key, 4)

    # deterministic symmetric 0/1 adjacency, no self-loops
    upper = jax.random.bernoulli(k_adj, 0.15, (N, N)).astype(jnp.float32)
    A = jnp.triu(upper, 1)
    A = A + A.T
    deg = jnp.sum(A, axis=1)
    dinv = jnp.where(deg > 0, 1.0 / jnp.sqrt(jnp.maximum(deg, 1e-12)), 0.0)

    X = jax.random.normal(k_feat, (N, F), jnp.float32)

    # GCN fc weight: xavier_uniform (stored [in, out]); bias zeros; skip weight ones
    limit = math.sqrt(6.0 / (F + H))
    W = jax.random.uniform(k_w, (F, H), jnp.float32, minval=-limit, maxval=limit)
    skip_w = jnp.ones((1, H), jnp.float32)
    bg = jnp.zeros((1, H), jnp.float32)

    # transform layer1: orthogonal init with gain sqrt(2), bias zeros
    raw = jax.random.normal(k_wt, (H, K), jnp.float32)
    Q, R = jnp.linalg.qr(raw)
    Q = Q * jnp.sign(jnp.diag(R))[None, :]
    Wt = (math.sqrt(2.0) * Q).astype(jnp.float32)
    bt = jnp.zeros((1, K), jnp.float32)

    loss = dmon_forward(A, dinv, X, W, skip_w, bg, Wt, bt,
                        n_clusters=K, cluster_size_reg=cluster_size_reg,
                        tile_rows=16)   # 4 node-row tiles, single pass over A
    loss = jax.block_until_ready(loss)

    ref = dmon_reference(A, dinv, X, W, skip_w, bg, Wt, bt,
                         n_clusters=K, cluster_size_reg=cluster_size_reg)
    if not jnp.allclose(loss[0], ref, rtol=5e-2, atol=3e-2):
        raise AssertionError(f"kernel loss {float(loss[0])} != reference {float(ref)}")
    print("KERNEL_OK")
</pallas_src>

<mosaic_0001>
module attributes {stable_mosaic.version = 11 : i64} {
  func.func @dmon_kernel(%arg0: i32, %arg1: memref<1xf32, #tpu.memory_space<smem>>, %arg2: memref<64x32xf32, #tpu.memory_space<vmem>>, %arg3: memref<32x32xf32, #tpu.memory_space<vmem>>, %arg4: memref<1x32xf32, #tpu.memory_space<vmem>>, %arg5: memref<1x32xf32, #tpu.memory_space<vmem>>, %arg6: memref<32x8xf32, #tpu.memory_space<vmem>>, %arg7: memref<1x8xf32, #tpu.memory_space<vmem>>, %arg8: memref<1x64xf32, #tpu.memory_space<vmem>>, %arg9: memref<16x64xbf16, #tpu.memory_space<vmem>>, %arg10: memref<16x1xf32, #tpu.memory_space<vmem>>, %arg11: memref<16x1xf32, #tpu.memory_space<vmem>>, %arg12: memref<1xf32, #tpu.memory_space<smem>>, %arg13: memref<64x32xf32, #tpu.memory_space<vmem>>, %arg14: memref<64x8xf32, #tpu.memory_space<vmem>>, %arg15: memref<8x64xf32, #tpu.memory_space<vmem>>, %arg16: memref<1x8xf32, #tpu.memory_space<vmem>>, %arg17: memref<1x8xf32, #tpu.memory_space<vmem>>) attributes {dimension_semantics = [#tpu.dimension_semantics<arbitrary>], iteration_bounds = array<i64: 4>, scalar_prefetch = 0 : i64, scratch_operands = 5 : i64, tpu.core_type = #tpu.core_type<tc>, window_params = [{transform_indices = @transform_0, window_bounds = array<i64: 1>}, {pipeline_mode = #tpu.pipeline_mode<synchronous>, transform_indices = @transform_1, window_bounds = array<i64: 64, 32>}, {pipeline_mode = #tpu.pipeline_mode<synchronous>, transform_indices = @transform_2, window_bounds = array<i64: 32, 32>}, {pipeline_mode = #tpu.pipeline_mode<synchronous>, transform_indices = @transform_3, window_bounds = array<i64: 1, 32>}, {pipeline_mode = #tpu.pipeline_mode<synchronous>, transform_indices = @transform_4, window_bounds = array<i64: 1, 32>}, {pipeline_mode = #tpu.pipeline_mode<synchronous>, transform_indices = @transform_5, window_bounds = array<i64: 32, 8>}, {pipeline_mode = #tpu.pipeline_mode<synchronous>, transform_indices = @transform_6, window_bounds = array<i64: 1, 8>}, {pipeline_mode = #tpu.pipeline_mode<synchronous>, transform_indices = @transform_7, window_bounds = array<i64: 1, 64>}, {transform_indices = @transform_8, window_bounds = array<i64: 16, 64>}, {transform_indices = @transform_9, window_bounds = array<i64: 16, 1>}, {transform_indices = @transform_10, window_bounds = array<i64: 16, 1>}, {transform_indices = @transform_11, window_bounds = array<i64: 1>}]} {
    %c16_i32 = arith.constant 16 : i32
    %0 = arith.muli %arg0, %c16_i32 : i32
    %1 = tpu.assume_multiple %0, 16 : i32
    %c0_i32 = arith.constant 0 : i32
    %2 = arith.cmpi eq, %arg0, %c0_i32 : i32
    %3 = arith.extui %2 : i1 to i32
    %c0_i32_0 = arith.constant 0 : i32
    %4 = arith.cmpi ne, %3, %c0_i32_0 : i32
    scf.if %4 {
      %c0_43 = arith.constant 0 : index
      %c0_44 = arith.constant 0 : index
      %71 = vector.load %arg2[%c0_43, %c0_44] : memref<64x32xf32, #tpu.memory_space<vmem>>, vector<64x32xf32>
      %c0_45 = arith.constant 0 : index
      %c0_46 = arith.constant 0 : index
      %72 = vector.load %arg3[%c0_45, %c0_46] : memref<32x32xf32, #tpu.memory_space<vmem>>, vector<32x32xf32>
      %cst_47 = arith.constant dense<0.000000e+00> : vector<64x32xf32>
      %73 = tpu.matmul %71, %72, %cst_47 {dimension_numbers = #tpu.dot_dimension_numbers<[1], [0], [0], [1], [0, 0, 1, 1], [], []>} : vector<64x32xf32>, vector<32x32xf32>, vector<64x32xf32> -> vector<64x32xf32>
      %c0_48 = arith.constant 0 : index
      %c0_49 = arith.constant 0 : index
      %74 = vector.load %arg13[%c0_48, %c0_49] : memref<64x32xf32, #tpu.memory_space<vmem>>, vector<64x32xf32>
      tpu.vector_store %arg13[%c0_48, %c0_49], %73 {strides = array<i32>} : memref<64x32xf32, #tpu.memory_space<vmem>>, vector<64x32xf32>,
      %cst_50 = arith.constant 0.000000e+00 : f32
      %75 = vector.broadcast %cst_50 : f32 to vector<8x64xf32>
      %c0_51 = arith.constant 0 : index
      %c0_52 = arith.constant 0 : index
      %76 = vector.load %arg15[%c0_51, %c0_52] : memref<8x64xf32, #tpu.memory_space<vmem>>, vector<8x64xf32>
      tpu.vector_store %arg15[%c0_51, %c0_52], %75 {strides = array<i32>} : memref<8x64xf32, #tpu.memory_space<vmem>>, vector<8x64xf32>,
      %cst_53 = arith.constant 0.000000e+00 : f32
      %77 = vector.broadcast %cst_53 : f32 to vector<1x8xf32>
      %c0_54 = arith.constant 0 : index
      %c0_55 = arith.constant 0 : index
      %78 = vector.load %arg16[%c0_54, %c0_55] : memref<1x8xf32, #tpu.memory_space<vmem>>, vector<1x8xf32>
      tpu.vector_store %arg16[%c0_54, %c0_55], %77 {strides = array<i32>} : memref<1x8xf32, #tpu.memory_space<vmem>>, vector<1x8xf32>,
      %cst_56 = arith.constant 0.000000e+00 : f32
      %79 = vector.broadcast %cst_56 : f32 to vector<1x8xf32>
      %c0_57 = arith.constant 0 : index
      %c0_58 = arith.constant 0 : index
      %80 = vector.load %arg17[%c0_57, %c0_58] : memref<1x8xf32, #tpu.memory_space<vmem>>, vector<1x8xf32>
      tpu.vector_store %arg17[%c0_57, %c0_58], %79 {strides = array<i32>} : memref<1x8xf32, #tpu.memory_space<vmem>>, vector<1x8xf32>,
      %cst_59 = arith.constant 0.000000e+00 : f32
      %c0_60 = arith.constant 0 : index
      %81 = memref.load %arg12[%c0_60] : memref<1xf32, #tpu.memory_space<smem>>
      memref.store %cst_59, %arg12[%c0_60] : memref<1xf32, #tpu.memory_space<smem>>
    } else {
    }
    %c0 = arith.constant 0 : index
    %c0_1 = arith.constant 0 : index
    %5 = vector.load %arg9[%c0, %c0_1] : memref<16x64xbf16, #tpu.memory_space<vmem>>, vector<16x64xbf16>
    %6 = arith.extf %5 : vector<16x64xbf16> to vector<16x64xf32>
    %c0_2 = arith.constant 0 : index
    %c0_3 = arith.constant 0 : index
    %7 = vector.load %arg10[%c0_2, %c0_3] : memref<16x1xf32, #tpu.memory_space<vmem>>, vector<16x1xf32>
    %8 = vector.broadcast %7 : vector<16x1xf32> to vector<16x64xf32>
    %9 = arith.mulf %6, %8 : vector<16x64xf32>
    %c0_4 = arith.constant 0 : index
    %c0_5 = arith.constant 0 : index
    %10 = vector.load %arg8[%c0_4, %c0_5] : memref<1x64xf32, #tpu.memory_space<vmem>>, vector<1x64xf32>
    %11 = vector.broadcast %10 : vector<1x64xf32> to vector<16x64xf32>
    %12 = arith.mulf %9, %11 : vector<16x64xf32>
    %c0_6 = arith.constant 0 : index
    %c0_7 = arith.constant 0 : index
    %13 = vector.load %arg13[%c0_6, %c0_7] : memref<64x32xf32, #tpu.memory_space<vmem>>, vector<64x32xf32>
    %cst = arith.constant dense<0.000000e+00> : vector<16x32xf32>
    %14 = tpu.matmul %12, %13, %cst {dimension_numbers = #tpu.dot_dimension_numbers<[1], [0], [0], [1], [0, 0, 1, 1], [], []>} : vector<16x64xf32>, vector<64x32xf32>, vector<16x32xf32> -> vector<16x32xf32>
    %15 = arith.index_cast %1 : i32 to index
    %c0_8 = arith.constant 0 : index
    %16 = vector.load %arg13[%15, %c0_8] : memref<64x32xf32, #tpu.memory_space<vmem>>, vector<16x32xf32>
    %c0_9 = arith.constant 0 : index
    %c0_10 = arith.constant 0 : index
    %17 = vector.load %arg4[%c0_9, %c0_10] : memref<1x32xf32, #tpu.memory_space<vmem>>, vector<1x32xf32>
    %18 = vector.broadcast %17 : vector<1x32xf32> to vector<16x32xf32>
    %19 = arith.mulf %16, %18 : vector<16x32xf32>
    %20 = arith.addf %19, %14 : vector<16x32xf32>
    %c0_11 = arith.constant 0 : index
    %c0_12 = arith.constant 0 : index
    %21 = vector.load %arg5[%c0_11, %c0_12] : memref<1x32xf32, #tpu.memory_space<vmem>>, vector<1x32xf32>
    %22 = vector.broadcast %21 : vector<1x32xf32> to vector<16x32xf32>
    %23 = arith.addf %20, %22 : vector<16x32xf32>
    %cst_13 = arith.constant 0.000000e+00 : f32
    %24 = vector.broadcast %cst_13 : f32 to vector<16x32xf32>
    %25 = arith.cmpf ogt, %23, %24 : vector<16x32xf32>
    %26 = math.exp %23 : vector<16x32xf32>
    %cst_14 = arith.constant 1.000000e+00 : f32
    %27 = vector.broadcast %cst_14 : f32 to vector<16x32xf32>
    %28 = arith.subf %26, %27 : vector<16x32xf32>
    %cst_15 = arith.constant 1.67326319 : f32
    %29 = vector.broadcast %cst_15 : f32 to vector<16x32xf32>
    %30 = arith.mulf %29, %28 : vector<16x32xf32>
    %31 = arith.select %25, %23, %30 : vector<16x32xi1>, vector<16x32xf32>
    %cst_16 = arith.constant 1.05070102 : f32
    %32 = vector.broadcast %cst_16 : f32 to vector<16x32xf32>
    %33 = arith.mulf %32, %31 : vector<16x32xf32>
    %c0_17 = arith.constant 0 : index
    %c0_18 = arith.constant 0 : index
    %34 = vector.load %arg6[%c0_17, %c0_18] : memref<32x8xf32, #tpu.memory_space<vmem>>, vector<32x8xf32>
    %cst_19 = arith.constant dense<0.000000e+00> : vector<16x8xf32>
    %35 = tpu.matmul %33, %34, %cst_19 {dimension_numbers = #tpu.dot_dimension_numbers<[1], [0], [0], [1], [0, 0, 1, 1], [], []>} : vector<16x32xf32>, vector<32x8xf32>, vector<16x8xf32> -> vector<16x8xf32>
    %c0_20 = arith.constant 0 : index
    %c0_21 = arith.constant 0 : index
    %36 = vector.load %arg7[%c0_20, %c0_21] : memref<1x8xf32, #tpu.memory_space<vmem>>, vector<1x8xf32>
    %37 = vector.broadcast %36 : vector<1x8xf32> to vector<16x8xf32>
    %38 = arith.addf %35, %37 : vector<16x8xf32>
    %cst_22 = arith.constant dense<0xFF800000> : vector<16xf32>
    %39 = vector.multi_reduction <maximumf>, %38, %cst_22 [1] : vector<16x8xf32> to vector<16xf32>
    %40 = vector.shape_cast %39 : vector<16xf32> to vector<16x1xf32>
    %41 = vector.broadcast %40 : vector<16x1xf32> to vector<16x8xf32>
    %42 = arith.subf %38, %41 : vector<16x8xf32>
    %43 = math.exp %42 : vector<16x8xf32>
    %cst_23 = arith.constant dense<0.000000e+00> : vector<16xf32>
    %44 = vector.multi_reduction <add>, %43, %cst_23 [1] : vector<16x8xf32> to vector<16xf32>
    %45 = vector.shape_cast %44 : vector<16xf32> to vector<16x1xf32>
    %46 = tpu.reciprocal %45 {approx = true} : vector<16x1xf32> -> vector<16x1xf32>
    %47 = vector.broadcast %46 : vector<16x1xf32> to vector<16x8xf32>
    %48 = arith.mulf %43, %47 : vector<16x8xf32>
    %49 = arith.index_cast %1 : i32 to index
    %c0_24 = arith.constant 0 : index
    %50 = vector.load %arg14[%49, %c0_24] : memref<64x8xf32, #tpu.memory_space<vmem>>, vector<16x8xf32>
    tpu.vector_store %arg14[%49, %c0_24], %48 {strides = array<i32>} : memref<64x8xf32, #tpu.memory_space<vmem>>, vector<16x8xf32>,
    %c0_25 = arith.constant 0 : index
    %c0_26 = arith.constant 0 : index
    %51 = vector.load %arg15[%c0_25, %c0_26] : memref<8x64xf32, #tpu.memory_space<vmem>>, vector<8x64xf32>
    %cst_27 = arith.constant dense<0.000000e+00> : vector<8x64xf32>
    %52 = tpu.matmul %48, %6, %cst_27 {dimension_numbers = #tpu.dot_dimension_numbers<[0], [0], [1], [1], [0, 1, 1, 1], [], []>} : vector<16x8xf32>, vector<16x64xf32>, vector<8x64xf32> -> vector<8x64xf32>
    %53 = arith.addf %51, %52 : vector<8x64xf32>
    %c0_28 = arith.constant 0 : index
    %c0_29 = arith.constant 0 : index
    %54 = vector.load %arg15[%c0_28, %c0_29] : memref<8x64xf32, #tpu.memory_space<vmem>>, vector<8x64xf32>
    tpu.vector_store %arg15[%c0_28, %c0_29], %53 {strides = array<i32>} : memref<8x64xf32, #tpu.memory_space<vmem>>, vector<8x64xf32>,
    %c0_30 = arith.constant 0 : index
    %c0_31 = arith.constant 0 : index
    %55 = vector.load %arg16[%c0_30, %c0_31] : memref<1x8xf32, #tpu.memory_space<vmem>>, vector<1x8xf32>
    %c0_32 = arith.constant 0 : index
    %c0_33 = arith.constant 0 : index
    %56 = vector.load %arg11[%c0_32, %c0_33] : memref<16x1xf32, #tpu.memory_space<vmem>>, vector<16x1xf32>
    %57 = vector.broadcast %56 : vector<16x1xf32> to vector<16x8xf32>
    %58 = arith.mulf %57, %48 : vector<16x8xf32>
    %cst_34 = arith.constant dense<0.000000e+00> : vector<8xf32>
    %59 = vector.multi_reduction <add>, %58, %cst_34 [0] : vector<16x8xf32> to vector<8xf32>
    %60 = vector.shape_cast %59 : vector<8xf32> to vector<1x8xf32>
    %61 = arith.addf %55, %60 : vector<1x8xf32>
    %c0_35 = arith.constant 0 : index
    %c0_36 = arith.constant 0 : index
    %62 = vector.load %arg16[%c0_35, %c0_36] : memref<1x8xf32, #tpu.memory_space<vmem>>, vector<1x8xf32>
    tpu.vector_store %arg16[%c0_35, %c0_36], %61 {strides = array<i32>} : memref<1x8xf32, #tpu.memory_space<vmem>>, vector<1x8xf32>,
    %c0_37 = arith.constant 0 : index
    %c0_38 = arith.constant 0 : index
    %63 = vector.load %arg17[%c0_37, %c0_38] : memref<1x8xf32, #tpu.memory_space<vmem>>, vector<1x8xf32>
    %cst_39 = arith.constant dense<0.000000e+00> : vector<8xf32>
    %64 = vector.multi_reduction <add>, %48, %cst_39 [0] : vector<16x8xf32> to vector<8xf32>
    %65 = vector.shape_cast %64 : vector<8xf32> to vector<1x8xf32>
    %66 = arith.addf %63, %65 : vector<1x8xf32>
    %c0_40 = arith.constant 0 : index
    %c0_41 = arith.constant 0 : index
    %67 = vector.load %arg17[%c0_40, %c0_41] : memref<1x8xf32, #tpu.memory_space<vmem>>, vector<1x8xf32>
    tpu.vector_store %arg17[%c0_40, %c0_41], %66 {strides = array<i32>} : memref<1x8xf32, #tpu.memory_space<vmem>>, vector<1x8xf32>,
    %c3_i32 = arith.constant 3 : i32
    %68 = arith.cmpi eq, %arg0, %c3_i32 : i32
    %69 = arith.extui %68 : i1 to i32
    %c0_i32_42 = arith.constant 0 : i32
    %70 = arith.cmpi ne, %69, %c0_i32_42 : i32
    scf.if %70 {
      %c0_43 = arith.constant 0 : index
      %c0_44 = arith.constant 0 : index
      %71 = vector.load %arg15[%c0_43, %c0_44] : memref<8x64xf32, #tpu.memory_space<vmem>>, vector<8x64xf32>
      %c0_45 = arith.constant 0 : index
      %c0_46 = arith.constant 0 : index
      %72 = vector.load %arg14[%c0_45, %c0_46] : memref<64x8xf32, #tpu.memory_space<vmem>>, vector<64x8xf32>
      %cst_47 = arith.constant dense<0.000000e+00> : vector<8x8xf32>
      %73 = tpu.matmul %71, %72, %cst_47 {dimension_numbers = #tpu.dot_dimension_numbers<[1], [0], [0], [1], [0, 0, 1, 1], [], []>} : vector<8x64xf32>, vector<64x8xf32>, vector<8x8xf32> -> vector<8x8xf32>
      %74 = tpu.iota {dimensions = array<i32: 0>} : vector<8x8xi32>
      %75 = tpu.iota {dimensions = array<i32: 1>} : vector<8x8xi32>
      %76 = arith.cmpi eq, %74, %75 : vector<8x8xi32>
      %cst_48 = arith.constant 0.000000e+00 : f32
      %77 = vector.broadcast %cst_48 : f32 to vector<8x8xf32>
      %78 = arith.select %76, %73, %77 : vector<8x8xi1>, vector<8x8xf32>
      %79 = vector.shape_cast %78 : vector<8x8xf32> to vector<1x8x8xf32>
      %cst_49 = arith.constant dense<0.000000e+00> : vector<1xf32>
      %80 = vector.multi_reduction <add>, %79, %cst_49 [1, 2] : vector<1x8x8xf32> to vector<1xf32>
      %81 = vector.shape_cast %80 : vector<1xf32> to vector<1x1x1xf32>
      %82 = vector.extract %81[0, 0, 0] : f32 from vector<1x1x1xf32>
      %c0_50 = arith.constant 0 : index
      %83 = memref.load %arg1[%c0_50] : memref<1xf32, #tpu.memory_space<smem>>
      %c0_51 = arith.constant 0 : index
      %c0_52 = arith.constant 0 : index
      %84 = vector.load %arg16[%c0_51, %c0_52] : memref<1x8xf32, #tpu.memory_space<vmem>>, vector<1x8xf32>
      %85 = arith.mulf %84, %84 : vector<1x8xf32>
      %86 = vector.shape_cast %85 : vector<1x8xf32> to vector<1x1x8xf32>
      %cst_53 = arith.constant dense<0.000000e+00> : vector<1xf32>
      %87 = vector.multi_reduction <add>, %86, %cst_53 [1, 2] : vector<1x1x8xf32> to vector<1xf32>
      %88 = vector.shape_cast %87 : vector<1xf32> to vector<1x1x1xf32>
      %89 = vector.extract %88[0, 0, 0] : f32 from vector<1x1x1xf32>
      %90 = arith.mulf %89, %83 : f32
      %91 = arith.subf %82, %90 : f32
      %cst_54 = arith.constant 0.000000e+00 : f32
      %92 = arith.subf %cst_54, %91 : f32
      %93 = arith.mulf %92, %83 : f32
      %c0_55 = arith.constant 0 : index
      %c0_56 = arith.constant 0 : index
      %94 = vector.load %arg17[%c0_55, %c0_56] : memref<1x8xf32, #tpu.memory_space<vmem>>, vector<1x8xf32>
      %95 = arith.mulf %94, %94 : vector<1x8xf32>
      %96 = vector.shape_cast %95 : vector<1x8xf32> to vector<1x1x8xf32>
      %cst_57 = arith.constant dense<0.000000e+00> : vector<1xf32>
      %97 = vector.multi_reduction <add>, %96, %cst_57 [1, 2] : vector<1x1x8xf32> to vector<1xf32>
      %98 = vector.shape_cast %97 : vector<1xf32> to vector<1x1x1xf32>
      %99 = vector.extract %98[0, 0, 0] : f32 from vector<1x1x1xf32>
      %100 = math.sqrt %99 : f32
      %cst_58 = arith.constant 6.400000e+01 : f32
      %101 = arith.divf %100, %cst_58 : f32
      %cst_59 = arith.constant 2.82842708 : f32
      %102 = arith.mulf %101, %cst_59 : f32
      %cst_60 = arith.constant 1.000000e+00 : f32
      %103 = arith.subf %102, %cst_60 : f32
      %cst_61 = arith.constant 1.000000e+00 : f32
      %104 = arith.mulf %103, %cst_61 : f32
      %105 = arith.addf %93, %104 : f32
      %c0_62 = arith.constant 0 : index
      %106 = memref.load %arg12[%c0_62] : memref<1xf32, #tpu.memory_space<smem>>
      memref.store %105, %arg12[%c0_62] : memref<1xf32, #tpu.memory_space<smem>>
    } else {
    }
    return
  }
  func.func @transform_0(%arg0: i32) -> i32 {
    %c0_i32 = arith.constant 0 : i32
    %c0_i32_0 = arith.constant 0 : i32
    return %c0_i32 : i32
  }
  func.func @transform_1(%arg0: i32) -> (i32, i32) {
    %c0_i32 = arith.constant 0 : i32
    %c0_i32_0 = arith.constant 0 : i32
    %c0_i32_1 = arith.constant 0 : i32
    return %c0_i32, %c0_i32_0 : i32, i32
  }
  func.func @transform_2(%arg0: i32) -> (i32, i32) {
    %c0_i32 = arith.constant 0 : i32
    %c0_i32_0 = arith.constant 0 : i32
    %c0_i32_1 = arith.constant 0 : i32
    return %c0_i32, %c0_i32_0 : i32, i32
  }
  func.func @transform_3(%arg0: i32) -> (i32, i32) {
    %c0_i32 = arith.constant 0 : i32
    %c0_i32_0 = arith.constant 0 : i32
    %c0_i32_1 = arith.constant 0 : i32
    return %c0_i32, %c0_i32_0 : i32, i32
  }
  func.func @transform_4(%arg0: i32) -> (i32, i32) {
    %c0_i32 = arith.constant 0 : i32
    %c0_i32_0 = arith.constant 0 : i32
    %c0_i32_1 = arith.constant 0 : i32
    return %c0_i32, %c0_i32_0 : i32, i32
  }
  func.func @transform_5(%arg0: i32) -> (i32, i32) {
    %c0_i32 = arith.constant 0 : i32
    %c0_i32_0 = arith.constant 0 : i32
    %c0_i32_1 = arith.constant 0 : i32
    return %c0_i32, %c0_i32_0 : i32, i32
  }
  func.func @transform_6(%arg0: i32) -> (i32, i32) {
    %c0_i32 = arith.constant 0 : i32
    %c0_i32_0 = arith.constant 0 : i32
    %c0_i32_1 = arith.constant 0 : i32
    return %c0_i32, %c0_i32_0 : i32, i32
  }
  func.func @transform_7(%arg0: i32) -> (i32, i32) {
    %c0_i32 = arith.constant 0 : i32
    %c0_i32_0 = arith.constant 0 : i32
    %c0_i32_1 = arith.constant 0 : i32
    return %c0_i32, %c0_i32_0 : i32, i32
  }
  func.func @transform_8(%arg0: i32) -> (i32, i32) {
    %c0_i32 = arith.constant 0 : i32
    %c0_i32_0 = arith.constant 0 : i32
    return %arg0, %c0_i32 : i32, i32
  }
  func.func @transform_9(%arg0: i32) -> (i32, i32) {
    %c0_i32 = arith.constant 0 : i32
    %c0_i32_0 = arith.constant 0 : i32
    return %arg0, %c0_i32 : i32, i32
  }
  func.func @transform_10(%arg0: i32) -> (i32, i32) {
    %c0_i32 = arith.constant 0 : i32
    %c0_i32_0 = arith.constant 0 : i32
    return %arg0, %c0_i32 : i32, i32
  }
  func.func @transform_11(%arg0: i32) -> i32 {
    %c0_i32 = arith.constant 0 : i32
    %c0_i32_0 = arith.constant 0 : i32
    return %c0_i32 : i32
  }
}

</mosaic_0001>

<bundles_post_ra>
// kernel: tpu_custom_call.1
= control target key start
LH: loop header
LB: loop body
LE: loop exit
PB: predicated region body
PF: predicated region fallthrough
CT: control target
= control target key end

     0   :  { %s1731_s0 = inlined_call_operand.<no memory space> [shape: f32[1], index: 0, kind: input, shape index: {}]   ;;  %s1732_s1 = inlined_call_operand.vmem [shape: f32[64,32], index: 1, kind: input, shape index: {}]   ;;  %s1733_s2 = inlined_call_operand.vmem [shape: f32[32,32], index: 2, kind: input, shape index: {}]   ;;  %s1734_s3 = inlined_call_operand.vmem [shape: f32[1,32], index: 3, kind: input, shape index: {}]   ;;  %s1735_s4 = inlined_call_operand.vmem [shape: f32[1,32], index: 4, kind: input, shape index: {}]   ;;  %s1736_s5 = inlined_call_operand.vmem [shape: f32[32,8], index: 5, kind: input, shape index: {}]   ;;  %s1737_s6 = inlined_call_operand.vmem [shape: f32[1,8], index: 6, kind: input, shape index: {}]   ;;  %s1738_s7 = inlined_call_operand.vmem [shape: f32[1,64], index: 7, kind: input, shape index: {}]   ;;  %s1739_s8 = inlined_call_operand.vmem [shape: bf16[64,64], index: 8, kind: input, shape index: {}]   ;;  %s1740_s9 = inlined_call_operand.vmem [shape: f32[64,1], index: 9, kind: input, shape index: {}]   ;;  %s1741_s10 = inlined_call_operand.vmem [shape: f32[64,1], index: 10, kind: input, shape index: {}]   ;;  %s1742_s11 = inlined_call_operand.hbm [shape: f32[1], index: 11, kind: output, shape index: {}]  }
   0x1   :  { %16 = sst [smem:[#allocation7]] %s1731_s0 }
   0x2   :  { %17 = vsyncpa [#allocation9], 0  ;;  %s1577_s19 = smov 0  }
   0x3 LB: > { %s1583_s20 = sadd.s32 4294967295, %s1502_s19   ;;  %p1227_p0 = scmp.ge.s32.totalorder %s1502_s19, 1  ;;  %s1502_s19 = sphi %s1577_s19, %s23_s19  }
   0x4   : > { %p357_p1 = scmp.lt.s32.totalorder %s1502_s19, 5 }
   0x6   : > { %p358_p2 = pnand %p1227_p0, %p357_p1 }
   0x7   : > { %s1228_s0 = sshll.u32 (!%p358_p2), %s1583_s20, 1  ;;  %s1234_s21 = sshll.u32 (!%p358_p2), %s1583_s20, 4 }
   0x8   : > { %361 = sbr.rel (%p358_p2) target bundleno = 2015 (0x7df), region = 64  ;;  %p403_p3 = scmp.lt.s32.totalorder (!%p358_p2), %s1228_s0, 7 }
   0x9   : > { %p1235_p4 = scmp.ne.s32.totalorder (!%p358_p2), %s1583_s20, 0 }
   0xf   : > { %s1744_s0 = smov (!%p403_p3, %s1228_s0), 7  ;;  %424 = sbr.rel (%p1235_p4) target bundleno = 246 (0xf6), region = 68 }
  0x10   : > { %s1229_s22 = sshll.u32 %s1744_s0, 2  ;;  %s1231_s23 = sshll.u32 %s1744_s0, 3  ;;  %v433_v0 = vld [vmem:[%s1733_s2] sm:$0xff] (!%p1235_p4)  ;;  %v434_v1 = vld [vmem:[%s1733_s2 + $0x8] sm:$0xff] (!%p1235_p4)  ;;  %v435_v2 = vld [vmem:[%s1733_s2 + $0x10] sm:$0xff] (!%p1235_p4)  ;;  %vm437_vm0 = vcmask (!%p1235_p4), 261120  }
  0x11   : > { %s1592_s26 = scalar_lea.vmem %s1739_s8, %s1229_s22  ;;  %s1597_s29 = scalar_lea.vmem %s1740_s9, %s1231_s23  ;;  %v1382_v3 = vpack.c.bf16 (!%p1235_p4), %v434_v1, %v433_v0  ;;  %v436_v4 = vld [vmem:[%s1733_s2 + $0x18] sm:$0xff] (!%p1235_p4)  ;;  %v425_v5 = vld [vmem:[%s1732_s1] sm:$0xff] (!%p1235_p4)  ;;  %v426_v8 = vld [vmem:[%s1732_s1 + $0x8] sm:$0xff] (!%p1235_p4)  ;;  %vm575_vm1 = vcmask (!%p1235_p4), 523264   ;;  %vm577_vm2 = vcmask (!%p1235_p4), 57344   ;;  %v1504_v14 = vmov (!%p1235_p4), 0.0  }
  0x12   : > { %s1602_s13 = scalar_lea.vmem %s1741_s10, %s1231_s23  ;;  %v429_v6 = vld [vmem:[%s1732_s1 + $0x20] sm:$0xff] (!%p1235_p4)  ;;  %v1386_v7 = vpack.c.bf16 (!%p1235_p4), %v436_v4, %v435_v2  ;;  %1314 = vmatprep.mubr.msk.f32.mxu0 (!%p1235_p4), %vm437_vm0, %v425_v5  ;;  %v430_v9 = vld [vmem:[%s1732_s1 + $0x28] sm:$0xff] (!%p1235_p4)  ;;  %v427_v10 = vld [vmem:[%s1732_s1 + $0x10] sm:$0xff] (!%p1235_p4)  ;;  %576 = vst.msk [vmem:[#allocation4] sm:$0xff] (!%p1235_p4), %vm575_vm1, %v1504_v14  ;;  %s1505_s27 = smov (!%p1235_p4), 0.0  }
  0x13   : > { %1320 = vmatprep.mubr.msk.f32.mxu1 (!%p1235_p4), %vm437_vm0, %v429_v6  ;;  %1383 = vmatprep.subr.bf16.mxu0 (!%p1235_p4), %v1382_v3  ;;  %v431_v11 = vld [vmem:[%s1732_s1 + $0x30] sm:$0xff] (!%p1235_p4)  ;;  %v428_v12 = vld [vmem:[%s1732_s1 + $0x18] sm:$0xff] (!%p1235_p4)  ;;  %578 = vst.msk [vmem:[#allocation5] sm:$0x1] (!%p1235_p4), %vm577_vm2, %v1504_v14  ;;  %579 = vst.msk [vmem:[#allocation6] sm:$0x1] (!%p1235_p4), %vm577_vm2, %v1504_v14 }
  0x14   : > { %1429 = vmatprep.subr.bf16.mxu1 (!%p1235_p4), %v1382_v3  ;;  %1385 = vmatpush3.bf16.msra.mxu0 (!%p1235_p4), %v1382_v3  ;;  %v432_v13 = vld [vmem:[%s1732_s1 + $0x38] sm:$0xff] (!%p1235_p4)  ;;  %581 = sst [smem:[#allocation8]] (!%p1235_p4), %s1505_s27 }
  0x15   : > { %1431 = vmatpush3.bf16.msra.mxu1 (!%p1235_p4), %v1382_v3  ;;  %1387 = vmatprep.subr.bf16.mxu0 (!%p1235_p4), %v1386_v7 }
  0x16   : > { %1430 = vmatprep.subr.bf16.mxu1 %v1386_v7 }
  0x18   : > { %1389 = vmatpush3.bf16.msra.mxu0 %v1386_v7 }
  0x19   : > { %1432 = vmatpush3.bf16.msra.mxu1 %v1386_v7 }
  0x1b   : > { %1315 = vmatmul.mubr.msk.f32.vlgmr.msra.gmra.mrb[0].mxu0 %vm437_vm0, %v426_v8 }
  0x1c   : > { %1321 = vmatmul.mubr.msk.f32.vlgmr.msra.gmra.mrb[0].mxu1 %vm437_vm0, %v430_v9  ;;  %1317 = vmatprep.mubr.msk.f32.mxu0 %vm437_vm0, %v427_v10 }
  0x1d   : > { %1323 = vmatprep.mubr.msk.f32.mxu1 %vm437_vm0, %v431_v11 }
  0x1f   : > { %1318 = vmatmul.mubr.msk.f32.gmra.mrb[2].mxu0 %vm437_vm0, %v428_v12 }
  0x20   : > { %1324 = vmatmul.mubr.msk.f32.gmra.mrb[2].mxu1 %vm437_vm0, %v432_v13 }
  0xee   : > { %v1316_v15 = vpop.f32.mrb[0].mxu0 }
  0xef   : > { %v1322_v16 = vpop.f32.mrb[0].mxu1  ;;  %568 = vst.msk [vmem:[#allocation2 + $0x8] sm:$0xff] %vm437_vm0, %v1316_v15  ;;  %v528_v17 = vpop.f32.mrb[1].mxu0 }
  0xf0   : > { %572 = vst.msk [vmem:[#allocation2 + $0x28] sm:$0xff] %vm437_vm0, %v1322_v16  ;;  %v548_v18 = vpop.f32.mrb[1].mxu1  ;;  %567 = vst.msk [vmem:[#allocation2] sm:$0xff] %vm437_vm0, %v528_v17 }
  0xf1   : > { %571 = vst.msk [vmem:[#allocation2 + $0x20] sm:$0xff] %vm437_vm0, %v548_v18 }
  0xf2   : > { %v1319_v19 = vpop.f32.mrb[2].mxu0 }
  0xf3   : > { %v1325_v20 = vpop.f32.mrb[2].mxu1  ;;  %570 = vst.msk [vmem:[#allocation2 + $0x18] sm:$0xff] %vm437_vm0, %v1319_v19  ;;  %v538_v21 = vpop.f32.mrb[3].mxu0 }
  0xf4   : > { %574 = vst.msk [vmem:[#allocation2 + $0x38] sm:$0xff] %vm437_vm0, %v1325_v20  ;;  %v558_v22 = vpop.f32.mrb[3].mxu1  ;;  %569 = vst.msk [vmem:[#allocation2 + $0x10] sm:$0xff] %vm437_vm0, %v538_v21 }
  0xf5   : > { %573 = vst.msk [vmem:[#allocation2 + $0x30] sm:$0xff] %vm437_vm0, %v558_v22 }
  0xf6 PF: > { %v586_v23 = vld [vmem:[%s1597_s29] sm:$0xff]  ;;  %v1506_v25 = vmov 0   ;;  %v610_v26 = vld [vmem:[#allocation2 + $0x8] sm:$0xff]  ;;  %vm617_vm3 = vcmask 523264   ;;  %v738_v51 = vld [vmem:[%s1736_s5 + $0x10] sm:$0xff]  ;;  %s699_s0 = scalar_lea.vmem [#allocation2], %s1234_s21 }
  0xf7   : > { %v609_v24 = vld [vmem:[#allocation2] sm:$0xff]  ;;  %1465 = vset.pattern.permute.xlu0 %v1506_v25  ;;  %v587_v31 = vld [vmem:[%s1597_s29 + $0x8] sm:$0xff]  ;;  %v739_v52 = vld [vmem:[%s1736_s5 + $0x18] sm:$0xff]  ;;  %vm747_vm6 = vcmask 261120   ;;  %vm829_vm7 = vcmask 64512   ;;  %vm1508_vm8 = vmmov 0  }
  0xf8   : > { %590 = vperm.xlu0 %1465, %v586_v23   ;;  %v1390_v29 = vpack.c.bf16 %v610_v26, %v609_v24  ;;  %v613_v32 = vld [vmem:[#allocation2 + $0x20] sm:$0xff]  ;;  %v614_v33 = vld [vmem:[#allocation2 + $0x28] sm:$0xff]  ;;  %v1410_v53 = vpack.c.bf16 %v739_v52, %v738_v51  ;;  %s852_s28 = scalar_lea.vmem [#allocation3], %s1234_s21  ;;  %vm989_vm9 = vcmask 57344   ;;  %vm888_vm10 = vcmask 130048   ;;  %p1255_p5 = scmp.ne.s32.totalorder %s1583_s20, 3 }
  0xf9   : > { %v1398_v34 = vpack.c.bf16 %v614_v33, %v613_v32  ;;  %v1660_v38 = vld [vmem:[%s1592_s26] sm:$0xff]   ;;  %v737_v49 = vld [vmem:[%s1736_s5 + $0x8] sm:$0xff]  ;;  %v1507_v33 = vmov 0.0|0.0   ;;  %vm1511_vm11 = vmmov (!%p1255_p5), 0   ;;  %s1105_s21 = sld [smem:[#allocation7]] (!%p1255_p5) }
  0xfa   : > { %v612_v28 = vld [vmem:[#allocation2 + $0x18] sm:$0xff]  ;;  %1391 = vmatprep.subr.bf16.mxu0 %v1390_v29  ;;  %v1264_v39 = vunpack.c.l.bf16 %v1660_v38  ;;  %v1244_v41 = vld [vmem:[%s1738_s7] ss:$0 sm:$0xff]  ;;  %v1265_v43 = vunpack.c.h.bf16 %v1660_v38  ;;  %v966_v32 = vld [vmem:[%s1602_s13 + $0x8] sm:$0xff] }
  0xfb   : > { %v611_v27 = vld [vmem:[#allocation2 + $0x10] sm:$0xff]  ;;  %1393 = vmatpush3.bf16.msra.mxu0 %v1390_v29  ;;  %v616_v36 = vld [vmem:[#allocation2 + $0x38] sm:$0xff]  ;;  %v736_v48 = vld [vmem:[%s1736_s5] sm:$0xff] }
  0xfc   : > { %v1394_v30 = vpack.c.bf16 %v612_v28, %v611_v27  ;;  %595 = vperm.xlu0 %1465, %v587_v31   ;;  %v615_v35 = vld [vmem:[#allocation2 + $0x30] sm:$0xff]  ;;  %v1406_v50 = vpack.c.bf16 %v737_v49, %v736_v48  ;;  %v701_v54 = vld [vmem:[%s699_s0 + $0x8] sm:$0xff]  ;;  %v1247_v55 = vld [vmem:[%s1734_s3] ss:$0 sm:$0xff] }
  0xfd   : > { %v1402_v37 = vpack.c.bf16 %v616_v36, %v615_v35  ;;  %v700_v56 = vld [vmem:[%s699_s0] sm:$0xff]  ;;  %v710_v57 = vmul.f32 %v1247_v55, %v701_v54 }
  0xfe   : > { %1395 = vmatprep.subr.bf16.mxu0 %v1394_v30  ;;  %1407 = vmatprep.subr.bf16.mxu1 %v1406_v50  ;;  %v709_v58 = vmul.f32 %v1247_v55, %v700_v56  ;;  %v1248_v60 = vld [vmem:[%s1735_s4] ss:$0 sm:$0xff] }
  0xff   : > { %1397 = vmatpush3.bf16.msra.mxu0 %v1394_v30  ;;  %1409 = vmatpush3.bf16.msra.mxu1 %v1406_v50  ;;  %v1251_v14 = vld [vmem:[%s1737_s6] ss:$0 sm:$0xff] }
 0x100   : > { %1399 = vmatprep.subr.bf16.mxu0 %v1398_v34  ;;  %1411 = vmatprep.subr.bf16.mxu1 %v1410_v53  ;;  %v965_v31 = vld [vmem:[%s1602_s13] sm:$0xff] }
 0x103   : > { %1401 = vmatpush3.bf16.msra.mxu0 %v1398_v34  ;;  %1413 = vmatpush3.bf16.msra.mxu1 %v1410_v53  ;;  %v1509_v34 = vmov 0.0  }
 0x104   : > { %1403 = vmatprep.subr.bf16.mxu0 %v1402_v37  ;;  %1414 = vmatprep.subr.bf16.mxu1 %v1507_v33 }
 0x107   : > { %1405 = vmatpush3.bf16.msra.mxu0 %v1402_v37 }
 0x177   : > { %v591_v40 = vpop.permute.xlu0 %590 }
 0x178   : > { %v598_v42 = vmul.f32 %v1264_v39, %v591_v40 }
 0x17a   : > { %v607_v44 = vmul.f32 %v1244_v41, %v598_v42 }
 0x17b   : > { %v596_v45 = vpop.permute.xlu0 %595 }
 0x17c   : > { %v599_v46 = vmul.f32 %v1265_v43, %v596_v45  ;;  %1342 = vmatprep.mubr.msk.f32.mxu0 %vm617_vm3, %v607_v44 }
 0x17e   : > { %v608_v47 = vmul.f32 %v1244_v41, %v599_v46 }
 0x180   : > { %1343 = vmatmul.mubr.msk.f32.vlgmr.msra.gmra.mrb[0].mxu0 %vm617_vm3, %v608_v47 }
 0x253   : > { %v1344_v59 = vpop.f32.mrb[0].mxu0 }
 0x254   : > { %v712_v61 = vadd.f32 %v1344_v59, %v710_v57  ;;  %v690_v62 = vpop.f32.mrb[1].mxu0 }
 0x255   : > { %v711_v63 = vadd.f32 %v709_v58, %v690_v62 }
 0x256   : > { %v721_v0 = vadd.f32 %v1248_v60, %v712_v61 }
 0x257   : > { %v720_v1 = vadd.f32 %v1248_v60, %v711_v63  ;;  %v991_v60 = vld [vmem:[#allocation6] sm:$0x1]  ;;  %v964_v63 = vld [vmem:[#allocation5] sm:$0x1] }
 0x258   : > { %v726_v2 = vmul.f32 1.442695, %v721_v0  ;;  %vm723_vm4 = vcmp.gt.f32.partialorder %v721_v0, 0.0 }
 0x259   : > { %v724_v3 = vmul.f32 1.442695, %v720_v1  ;;  %vm722_vm5 = vcmp.gt.f32.partialorder %v720_v1, 0.0 }
 0x25a   : > { %1466 = vpow2.f32 %v726_v2 }
 0x25b   : > { %1468 = vpow2.f32 %v724_v3 }
 0x264   : > { %v1467_v4 = vpop.eup %1466 }
 0x265   : > { %v1469_v5 = vpop.eup %1468  ;;  %v1250_v6 = vadd.f32 -1.0, %v1467_v4  ;;  %v855_v4 = vld [vmem:[#allocation4] sm:$0xff] }
 0x266   : > { %v1249_v7 = vadd.f32 -1.0, %v1469_v5 }
 0x267   : > { %v731_v8 = vmul.f32 1.6732632, %v1250_v6 }
 0x268   : > { %v730_v9 = vmul.f32 1.6732632, %v1249_v7 }
 0x269   : > { %v733_v10 = vsel %vm723_vm4, %v721_v0, %v731_v8 }
 0x26a   : > { %v732_v11 = vsel %vm722_vm5, %v720_v1, %v730_v9  ;;  %v735_v13 = vmul.f32 1.050701, %v733_v10 }
 0x26b   : > { %v734_v12 = vmul.f32 1.050701, %v732_v11  ;;  %v1510_v11 = vmov (!%p1255_p5), 0.0|0.0  }
 0x26c   : > { %1417 = vmatprep.subr.bf16.mxu0 (!%p1255_p5), %v1510_v11 }
 0x26d   : > { %1353 = vmatprep.mubr.msk.f32.mxu1 %vm747_vm6, %v734_v12 }
 0x26e   : > { %1354 = vmatmul.mubr.msk.f32.vlgmr.msra.gmra.mrb[0].mxu1 %vm747_vm6, %v735_v13 }
 0x26f   : > { %1360 = vmatprep.mubr.msk.f32.mxu1 %vm1508_vm8, %v1509_v34  ;;  %1416 = vmatpush3.bf16.msra.mxu1 %v1660_v38 }
 0x341   : > { %v1355_v15 = vpop.f32.mrb[0].mxu1 }
 0x342   : > { %v820_v16 = vpop.f32.mrb[1].mxu1  ;;  %v826_v18 = vadd.f32 %v1355_v15, %v1251_v14 }
 0x343   : > { %v821_v17 = vadd.f32 %v1251_v14, %v820_v16  ;;  %v1512_v14 = vmov (!%p1255_p5), 0.0  }
 0x344   : > { %v833_v20 = vsel %vm829_vm7, %v826_v18, -inf  ;;  %1379 = vmatprep.mubr.msk.f32.mxu0 (!%p1255_p5), %vm1511_vm11, %v1512_v14 }
 0x345   : > { %v830_v19 = vsel %vm829_vm7, %v821_v17, -inf }
 0x346   : > { %831 = vmax.xlane.f32.xlu1 %v830_v19 }
 0x34a   : > { %834 = vmax.xlane.f32.xlu1 %v833_v20 }
 0x3d3   : > { %v832_v21 = vpop.xlane.xlu1 %831 }
 0x3d4   : > { %v836_v22 = vsub.f32 %v821_v17, %v832_v21 }
 0x3d6   : > { %v838_v23 = vmul.f32 1.442695, %v836_v22 }
 0x3d7   : > { %v835_v24 = vpop.xlane.xlu1 %834 }
 0x3d8   : > { %1470 = vpow2.f32 %v838_v23  ;;  %v837_v25 = vsub.f32 %v826_v18, %v835_v24 }
 0x3da   : > { %v840_v26 = vmul.f32 1.442695, %v837_v25 }
 0x3dc   : > { %1472 = vpow2.f32 %v840_v26  ;;  %v1089_v26 = vlaneseq (!%p1255_p5) }
 0x3e2   : > { %v1471_v27 = vpop.eup %1470 }
 0x3e3   : > { %v842_v28 = vsel %vm829_vm7, %v1471_v27, 0.0 }
 0x3e4   : > { %843 = vadd.xlane.f32.xlu0 %v842_v28  ;;  %v1092_v28 = vand.u32 (!%p1255_p5), 127, %v1089_v26 }
 0x3e6   : > { %v1473_v29 = vpop.eup %1472 }
 0x3e7   : > { %v845_v30 = vsel %vm829_vm7, %v1473_v29, 0.0 }
 0x3e8   : > { %846 = vadd.xlane.f32.xlu1 %v845_v30 }
 0x3fa   : > { %969 = vperm.xlu0 %1465, %v965_v31  }
 0x3fe   : > { %974 = vperm.xlu0 %1465, %v966_v32  }
 0x471   : > { %v844_v35 = vpop.xlane.xlu0 %843 }
 0x472   : > { %1474 = vrcp.f32 %v844_v35 }
 0x475   : > { %v847_v36 = vpop.xlane.xlu1 %846 }
 0x476   : > { %1476 = vrcp.f32 %v847_v36 }
 0x479   : > { %v970_v39 = vpop.permute.xlu0 %969 }
 0x47c   : > { %v1475_v37 = vpop.eup %1474 }
 0x47d   : > { %v850_v40 = vmul.f32 %v1475_v37, %v1471_v27  ;;  %v975_v44 = vpop.permute.xlu0 %974  ;;  %v1090_v27 = vshrl.u32 (!%p1255_p5), %v1089_v26, 7 }
 0x47f   : > { %853 = vst.msk [vmem:[%s852_s28] sm:$0xff] %vm829_vm7, %v850_v40  ;;  %856 = vxpose.xlu1.b32.start [1/2] (short) (narrow) %v850_v40, 8  ;;  %v977_v42 = vmul.f32 %v970_v39, %v850_v40  ;;  %v992_v45 = vsel %vm829_vm7, %v850_v40, 0.0  ;;  %vm1093_vm12 = vcmp.eq.s32.totalorder (!%p1255_p5), %v1090_v27, %v1092_v28 }
 0x480   : > { %v1477_v41 = vpop.eup %1476 }
 0x481   : > { %v851_v43 = vmul.f32 %v1477_v41, %v1473_v29  ;;  %v979_v48 = vsel %vm829_vm7, %v977_v42, 0.0 }
 0x483   : > { %854 = vst.msk [vmem:[%s852_s28 + $0x8] sm:$0xff] %vm829_vm7, %v851_v43  ;;  %v978_v38 = vmul.f32 %v975_v44, %v851_v43  ;;  %v993_v46 = vsel %vm829_vm7, %v851_v43, 0.0  ;;  %857 = vxpose.xlu1.b32.end [2/2] (short) (narrow) %v851_v43, 8 }
 0x484   : > { %v994_v47 = vadd.f32 %v993_v46, %v992_v45 }
 0x485   : > { %v980_v49 = vsel %vm829_vm7, %v978_v38, 0.0 }
 0x486   : > { %v981_v50 = vadd.f32 %v980_v49, %v979_v48  ;;  %v995_v51 = vrot.slane %v994_v47, 4 }
 0x488   : > { %v982_v52 = vrot.slane %v981_v50, 4  ;;  %v996_v53 = vadd.f32 %v995_v51, %v994_v47 }
 0x48a   : > { %v983_v54 = vadd.f32 %v982_v52, %v981_v50  ;;  %v997_v55 = vrot.slane %v996_v53, 2  ;;  %v1008_v8 = vld [vmem:[#allocation3] sm:$0xff] (!%p1255_p5)  ;;  %v1009_v9 = vld [vmem:[#allocation3 + $0x8] sm:$0xff] (!%p1255_p5)  ;;  %v1010_v10 = vld [vmem:[#allocation3 + $0x10] sm:$0xff] (!%p1255_p5) }
 0x48b   : > { %v1418_v12 = vpack.c.bf16 (!%p1255_p5), %v1009_v9, %v1008_v8  ;;  %v1011_v13 = vld [vmem:[#allocation3 + $0x18] sm:$0xff] (!%p1255_p5)  ;;  %v1012_v16 = vld [vmem:[#allocation3 + $0x20] sm:$0xff] (!%p1255_p5)  ;;  %v1013_v17 = vld [vmem:[#allocation3 + $0x28] sm:$0xff] (!%p1255_p5) }
 0x48c   : > { %v984_v56 = vrot.slane %v983_v54, 2  ;;  %v998_v57 = vadd.f32 %v997_v55, %v996_v53  ;;  %v1421_v15 = vpack.c.bf16 (!%p1255_p5), %v1011_v13, %v1010_v10  ;;  %v1424_v18 = vpack.c.bf16 (!%p1255_p5), %v1013_v17, %v1012_v16  ;;  %v1014_v19 = vld [vmem:[#allocation3 + $0x30] sm:$0xff] (!%p1255_p5)  ;;  %v1015_v20 = vld [vmem:[#allocation3 + $0x38] sm:$0xff] (!%p1255_p5) }
 0x48d   : > { %1419 = vmatpush3.bf16.msra.mxu0 (!%p1255_p5), %v1418_v12  ;;  %v1427_v21 = vpack.c.bf16 (!%p1255_p5), %v1015_v20, %v1014_v19 }
 0x48e   : > { %v985_v58 = vadd.f32 %v984_v56, %v983_v54  ;;  %v999_v59 = vrot.slane %v998_v57, 1  ;;  %1420 = vmatprep.subr.bf16.mxu0 (!%p1255_p5), %v1510_v11 }
 0x490   : > { %v986_v61 = vrot.slane %v985_v58, 1  ;;  %v1000_v62 = vadd.f32 %v999_v59, %v998_v57 }
 0x491   : > { %1422 = vmatpush3.bf16.msra.mxu0 (!%p1255_p5), %v1421_v15 }
 0x492   : > { %v987_v0 = vadd.f32 %v986_v61, %v985_v58  ;;  %v1001_v1 = vadd.f32 %v1000_v62, %v991_v60  ;;  %1423 = vmatprep.subr.bf16.mxu0 (!%p1255_p5), %v1510_v11 }
 0x494   : > { %v988_v2 = vadd.f32 %v987_v0, %v964_v63  ;;  %1002 = vst.msk [vmem:[#allocation6] sm:$0x1] %vm989_vm9, %v1001_v1 }
 0x495   : > { %1425 = vmatpush3.bf16.msra.mxu0 (!%p1255_p5), %v1424_v18 }
 0x496   : > { %990 = vst.msk [vmem:[#allocation5] sm:$0x1] %vm989_vm9, %v988_v2  ;;  %1426 = vmatprep.subr.bf16.mxu0 (!%p1255_p5), %v1510_v11 }
 0x499   : > { %1428 = vmatpush3.bf16.msra.mxu0 (!%p1255_p5), %v1427_v21 }
 0x49b   : > { %v1122_v23 = vld [vmem:[#allocation6] sm:$0x1] (!%p1255_p5) }
 0x49c   : > { %v1123_v24 = vmul.f32 (!%p1255_p5), %v1122_v23, %v1122_v23 }
 0x49d   : > { %v1106_v29 = vld [vmem:[#allocation5] sm:$0x1] (!%p1255_p5) }
 0x49e   : > { %v1124_v25 = vsel (!%p1255_p5), %vm989_vm9, %v1123_v24, 0.0  ;;  %v1107_v31 = vmul.f32 (!%p1255_p5), %v1106_v29, %v1106_v29 }
 0x4a0   : > { %v1108_v35 = vsel (!%p1255_p5), %vm989_vm9, %v1107_v31, 0.0 }
 0x4aa   : > { %1125 = vadd.xlane.f32.xlu1 (!%p1255_p5), %v1124_v25 }
 0x4ff   : > { %v872_v3 = vpop.trf.xlu1 }
 0x500   : > { %1361 = vmatmul.mubr.msk.f32.vlgmr.msra.gmra.mrb[2].mxu1 %vm888_vm10, %v872_v3 }
 0x537   : > { %v1126_v36 = vpop.xlane.xlu1 (!%p1255_p5), %1125 }
 0x538   : > { %v1127_v37 = vrot.slane (!%p1255_p5), %v1126_v36, 4 }
 0x53a   : > { %v1128_v39 = vadd.f32 (!%p1255_p5), %v1127_v37, %v1126_v36 }
 0x53c   : > { %v1129_v43 = vrot.slane (!%p1255_p5), %v1128_v39, 2 }
 0x53e   : > { %v1130_v48 = vadd.f32 (!%p1255_p5), %v1129_v43, %v1128_v39 }
 0x540   : > { %v1131_v53 = vrot.slane (!%p1255_p5), %v1130_v48, 1 }
 0x542   : > { %v1132_v56 = vadd.f32 (!%p1255_p5), %v1131_v53, %v1130_v48 }
 0x5d0   : > { %1006 = sbr.rel (%p1255_p5) target bundleno = 2000 (0x7d0), region = 72 }
 0x5d3   : > { %v958_v5 = vpop.f32.mrb[2].mxu1 }
 0x5d4   : > { %v962_v6 = vadd.f32 %v958_v5, %v855_v4  ;;  %v1362_v7 = vpop.f32.mrb[3].mxu1 }
 0x5d6   : > { %963 = vst.msk [vmem:[#allocation4] sm:$0xff] %vm617_vm3, %v962_v6 }
 0x5dd   : > { %v1007_v22 = vld [vmem:[#allocation4] sm:$0xff] }
 0x5de   : > { %1380 = vmatmul.mubr.msk.f32.vlgmr.msra.gmra.mrb[0].mxu0 %vm617_vm3, %v1007_v22 }
 0x6b1   : > { %v1085_v30 = vpop.f32.mrb[0].mxu0 }
 0x6b2   : > { %v1381_v32 = vpop.f32.mrb[1].mxu0  ;;  %v1094_v33 = vsel %vm1093_vm12, %v1085_v30, 0.0 }
 0x6b3   : > { %v1095_v34 = vsel %vm829_vm7, %v1094_v33, 0.0 }
 0x6b4   : > { %1096 = vadd.xlane.f32.xlu0 %v1095_v34 }
 0x6b8   : > { %1109 = vadd.xlane.f32.xlu0 %v1108_v35 }
 0x741   : > { %v1097_v40 = vpop.xlane.xlu0 %1096 }
 0x742   : > { %v1098_v41 = vrot.slane %v1097_v40, 4 }
 0x744   : > { %v1099_v42 = vadd.f32 %v1098_v41, %v1097_v40 }
 0x745   : > { %v1110_v44 = vpop.xlane.xlu0 %1109 }
 0x746   : > { %v1100_v45 = vrot.slane %v1099_v42, 2  ;;  %v1111_v38 = vrot.slane %v1110_v44, 4 }
 0x748   : > { %v1112_v46 = vadd.f32 %v1111_v38, %v1110_v44  ;;  %v1101_v47 = vadd.f32 %v1100_v45, %v1099_v42 }
 0x74a   : > { %v1113_v49 = vrot.slane %v1112_v46, 2  ;;  %v1102_v50 = vrot.slane %v1101_v47, 1 }
 0x74c   : > { %v1114_v51 = vadd.f32 %v1113_v49, %v1112_v46  ;;  %v1103_v52 = vadd.f32 %v1102_v50, %v1101_v47 }
 0x74e   : > { %1433 = vpush %v1103_v52  ;;  %v1115_v54 = vrot.slane %v1114_v51, 1 }
 0x750   : > { %v1116_v55 = vadd.f32 %v1115_v54, %v1114_v51 }
 0x752   : > { %1435 = vpush %v1116_v55 }
 0x753   : > { %1437 = vpush %v1132_v56 }
 0x77f   : > { %s1434_s13 = spop %1433 }
 0x783   : > { %s1436_s26 = spop %1435 }
 0x784   : > { %s1118_s30 = smul.f32 %s1436_s26, %s1105_s21  ;;  %s1438_s12 = spop %1437 }
 0x785   : > { %v1134_v57 = vstv %s1438_s12 }
 0x786   : > { %s1119_s14 = ssub.f32 %s1434_s13, %s1118_s30  ;;  %1478 = vrsqrt.f32 %v1134_v57  ;;  %vm1137_vm13 = vcmp.eq.f32.partialorder %v1134_v57, inf  ;;  %v1140_v60 = vand.u32 2147483648, %v1134_v57  ;;  %vm1139_vm14 = vcmp.eq.f32.partialorder %v1134_v57, 0.0 }
 0x788   : > { %s1120_s16 = ssub.f32 0.0, %s1119_s14 }
 0x78a   : > { %s1121_s0 = smul.f32 %s1120_s16, %s1105_s21 }
 0x790   : > { %v1479_v58 = vpop.eup %1478 }
 0x791   : > { %v1136_v59 = vmul.f32 %v1479_v58, %v1134_v57 }
 0x793   : > { %v1138_v61 = vsel %vm1137_vm13, %v1134_v57, %v1136_v59 }
 0x794   : > { %v1141_v62 = vsel %vm1139_vm14, %v1140_v60, %v1138_v61 }
 0x795   : > { %1439 = vpush %v1141_v62 }
 0x7c6   : > { %s1440_s15 = spop %1439 }
 0x7c7   : > { %s1145_s17 = smul.f32 0.015625, %s1440_s15 }
 0x7c9   : > { %s1146_s18 = smul.f32 2.828427, %s1145_s17 }
 0x7cb   : > { %s1257_s22 = sadd.f32 -1.0, %s1146_s18 }
 0x7cd   : > { %s1148_s23 = sadd.f32 %s1257_s22, %s1121_s0 }
 0x7cf   : > { %1150 = sst [smem:[#allocation8]] %s1148_s23 }
 0x7d0 PF: > { %p1445_p6 = scmp.eq.s32.totalorder %s1583_s20, 3  ;;  %s1480_s27 = scalar_lea.hbm %s1742_s11, 16 }
 0x7d1   : > { %p1481_p7 = scmp.ne.s32.totalorder %s1742_s11, %s1480_s27  ;;  %p1486_p10 = scmp.lt.u32.totalorder %s1480_s27, %s1742_s11 }
 0x7d3   : > { %p1482_p8 = pnand %p1481_p7, %p1445_p6 }
 0x7d5   : > { %p1483_p9 = pneg %p1482_p8 }
 0x7d7   : > { %p1488_p11 = pnand %p1486_p10, %p1483_p9 }
 0x7d9   : > { %1491 = shalt.err (!%p1488_p11)
}
 0x7da   : > { %s1513_s21 = smov [#allocation8]  }
 0x7db   : > { %1442 = dma.smem_to_hbm (%p1445_p6), %s1513_s21, 16, %s1742_s11, [#allocation9]  }
 0x7dc   : > { %1497 = dma.done.wait (%p1445_p6), [#allocation9], 16  }
 0x7dd   : > { %1499 = vsyncadd (%p1445_p6), [#allocation9], 4294967280 }
 0x7de   : > { %1164 = sfence }
 0x7df PF: > { %s23_s19 = sadd.s32 1, %s1502_s19  }
 0x7e0   : > { %p20_p12 = scmp.ge.s32.totalorder %s23_s19, 6  }
 0x7e2   :  { %22 = sbr.rel (!%p20_p12) target bundleno = 3 (0x3), region = 109 }
 0x7e9   :  { %1170 = vsyncpa [#allocation9], 1 }
 0x7ea   :  { %1172 = vsyncpa [#allocation9 + $0x1], 1 }

</bundles_post_ra>
